<compile_context>
chip_gen: v7x
topology: tpu7x:2x2x1
jax: 0.10.0
libtpu: 0.0.40
codegen_flags: <defaults>
</compile_context>

<pallas_src>
import jax
import jax.numpy as jnp
from jax import lax
from jax.experimental import pallas as pl
from jax.experimental.pallas import tpu as pltpu

NEG_SLOPE = 0.01


def _leaky_relu(x):
    return jnp.where(x > 0, x, NEG_SLOPE * x)


def conv_block_kernel(xp_ref, w1_ref, b1_ref, w2_ref, b2_ref, wr_ref, br_ref,
                      o_ref, y1p_ref):
    """One batch element per grid step, row-flattened NHWC layout.

    xp_ref : (1, H+2, (W+2)*Cin)        bf16  spatially padded, row-flattened x
    w1_ref : (3, (W+2)*Cin, (W+2)*Cout) bf16  banded conv1 weights (per kh)
    b1_ref : (1, (W+2)*Cout)            f32   conv1 bias (zero in w-halo cols)
    w2_ref : (3, (W+2)*Cout, W*Cout)    bf16  banded conv2 weights (per kh)
    b2_ref : (1, W*Cout)                f32
    wr_ref : ((W+2)*Cin, W*Cout)        bf16  banded 1x1 residual weights
    br_ref : (1, W*Cout)                f32
    o_ref  : (1, H, W*Cout)             f32   lane-dense output rows
    y1p_ref: VMEM scratch (H+2, (W+2)*Cout) bf16, padded intermediate
    """
    H = o_ref.shape[1]
    n1 = y1p_ref.shape[1]                                  # (W+2)*Cout

    xp = xp_ref[0]                                         # (H+2, (W+2)*Cin)

    # ---- conv1 + LeakyReLU: 3 banded matmuls, K=(W+2)*Cin, N=(W+2)*Cout ----
    acc1 = jnp.dot(xp[0:H, :], w1_ref[0], preferred_element_type=jnp.float32)
    acc1 = acc1 + jnp.dot(xp[1:H + 1, :], w1_ref[1],
                          preferred_element_type=jnp.float32)
    acc1 = acc1 + jnp.dot(xp[2:H + 2, :], w1_ref[2],
                          preferred_element_type=jnp.float32)
    y1 = _leaky_relu(acc1 + b1_ref[...])                   # (H, (W+2)*Cout) f32

    # Refresh only the two halo rows (not the whole scratch).  The interior
    # rows' w-halo columns are zero because the banded conv1 weight and bias
    # have zero columns there (and LeakyReLU(0) == 0).
    zrow = jnp.zeros((1, n1), y1p_ref.dtype)
    y1p_ref[0:1, :] = zrow
    y1p_ref[H + 1:H + 2, :] = zrow
    y1p_ref[1:H + 1, :] = y1.astype(y1p_ref.dtype)         # full-lane row store

    # ---- conv2 + LeakyReLU: 3 banded matmuls, K=(W+2)*Cout, N=W*Cout ----
    acc2 = jnp.dot(y1p_ref[0:H, :], w2_ref[0],
                   preferred_element_type=jnp.float32)
    acc2 = acc2 + jnp.dot(y1p_ref[1:H + 1, :], w2_ref[1],
                          preferred_element_type=jnp.float32)
    acc2 = acc2 + jnp.dot(y1p_ref[2:H + 2, :], w2_ref[2],
                          preferred_element_type=jnp.float32)
    y2 = _leaky_relu(acc2 + b2_ref[...])                   # (H, W*Cout) f32

    # ---- 1x1 residual conv: one banded matmul on the same input rows ----
    res = jnp.dot(xp[1:H + 1, :], wr_ref[...],
                  preferred_element_type=jnp.float32) + br_ref[...]

    o_ref[0] = y2 + res                                    # unmasked, lane-dense


def _build_params(w1, b1, w2, b2, wr, br, W, compute_dtype=jnp.bfloat16):
    """Fold the 3 horizontal taps + channel contraction into banded matrices
    over the row-flattened (w, c) lane axis.  One-time weight/layout prep
    (in a real model this is done once, not per forward call)."""
    Cout, Cin = w1.shape[0], w1.shape[1]
    f32 = jnp.float32

    # PyTorch OIHW -> (kh, kw, ci, co)
    w1t = jnp.transpose(w1, (2, 3, 1, 0)).astype(f32)        # (3,3,Cin,Cout)
    w2t = jnp.transpose(w2, (2, 3, 1, 0)).astype(f32)        # (3,3,Cout,Cout)
    wrt = jnp.transpose(wr[:, :, 0, 0], (1, 0)).astype(f32)  # (Cin,Cout)

    p = jnp.arange(W + 2)
    wq = jnp.arange(W)
    kw = jnp.arange(3)
    # sel[p, w, kw] == 1 iff padded input column p feeds output column w
    # through horizontal tap kw (p == w + kw).
    sel = (p[:, None, None] == wq[None, :, None] + kw[None, None, :]).astype(f32)

    def banded(wt, cin, cout, pad_out_halo):
        big = jnp.einsum('pwk,hkio->hpiwo', sel, wt)          # (3,W+2,ci,W,co)
        big = big.reshape(3, (W + 2) * cin, W * cout)
        if pad_out_halo:
            # conv1 writes directly into the padded intermediate layout:
            # output columns get a zero w-halo on both sides.
            big = jnp.pad(big, ((0, 0), (0, 0), (cout, cout)))
        return big.astype(compute_dtype)

    w1big = banded(w1t, Cin, Cout, True)      # (3, (W+2)*Cin, (W+2)*Cout)
    w2big = banded(w2t, Cout, Cout, False)    # (3, (W+2)*Cout, W*Cout)

    sel1 = (p[:, None] == wq[None, :] + 1).astype(f32)        # (W+2, W)
    wrbig = jnp.einsum('pw,io->piwo', sel1, wrt)
    wrbig = wrbig.reshape((W + 2) * Cin, W * Cout).astype(compute_dtype)

    b1big = jnp.pad(jnp.tile(b1.astype(f32), W), (Cout, Cout))[None, :]
    b2big = jnp.tile(b2.astype(f32), W)[None, :]
    brbig = jnp.tile(br.astype(f32), W)[None, :]
    return w1big, b1big, w2big, b2big, wrbig, brbig


def conv_block_pallas_nhwc(x_nhwc, w1, b1, w2, b2, wr, br,
                           compute_dtype=jnp.bfloat16):
    """x_nhwc: (B, H, W, Cin) f32, PyTorch-layout weights.  Returns NHWC f32."""
    B, H, W, Cin = x_nhwc.shape
    Cout = w1.shape[0]

    w1big, b1big, w2big, b2big, wrbig, brbig = _build_params(
        w1, b1, w2, b2, wr, br, W, compute_dtype)

    # Spatial pad + row-flatten + bf16 cast: one layout pass that XLA fuses
    # with the producer; afterwards every in-kernel access is a contiguous
    # full-lane row slice (no per-tap unaligned slice+reshape copies).
    xp = jnp.pad(x_nhwc, ((0, 0), (1, 1), (1, 1), (0, 0)))
    xp = xp.reshape(B, H + 2, (W + 2) * Cin).astype(compute_dtype)

    # TODO(synk): for large images add a row-tile grid axis with a 1-row halo
    # (and re-budget tiles for v7x's 64 MiB VMEM); and for large W switch to a
    # W-tiled banded weight so (W+2)*C stays lane-sized.
    out = pl.pallas_call(
        conv_block_kernel,
        out_shape=jax.ShapeDtypeStruct((B, H, W * Cout), jnp.float32),
        grid_spec=pltpu.PrefetchScalarGridSpec(
            num_scalar_prefetch=0,
            grid=(B,),
            in_specs=[
                pl.BlockSpec((1, H + 2, (W + 2) * Cin), lambda b: (b, 0, 0)),
                pl.BlockSpec((3, (W + 2) * Cin, (W + 2) * Cout),
                             lambda b: (0, 0, 0)),
                pl.BlockSpec((1, (W + 2) * Cout), lambda b: (0, 0)),
                pl.BlockSpec((3, (W + 2) * Cout, W * Cout),
                             lambda b: (0, 0, 0)),
                pl.BlockSpec((1, W * Cout), lambda b: (0, 0)),
                pl.BlockSpec(((W + 2) * Cin, W * Cout), lambda b: (0, 0)),
                pl.BlockSpec((1, W * Cout), lambda b: (0, 0)),
            ],
            out_specs=pl.BlockSpec((1, H, W * Cout), lambda b: (b, 0, 0)),
            scratch_shapes=[
                pltpu.VMEM((H + 2, (W + 2) * Cout), compute_dtype)],
        ),
        compiler_params=pltpu.CompilerParams(
            dimension_semantics=("parallel",)),      # shards batch over TCs
    )(xp, w1big, b1big, w2big, b2big, wrbig, brbig)

    return out.reshape(B, H, W, Cout)


def conv_block_pallas(x_nchw, w1, b1, w2, b2, wr, br):
    """NCHW adapter matching the PyTorch module interface."""
    # TODO(synk): in an NHWC-native model these two transposes disappear;
    # keep the whole network NHWC and call conv_block_pallas_nhwc directly.
    x_nhwc = jnp.transpose(x_nchw, (0, 2, 3, 1))
    out_nhwc = conv_block_pallas_nhwc(x_nhwc, w1, b1, w2, b2, wr, br)
    return jnp.transpose(out_nhwc, (0, 3, 1, 2))


def conv_block_reference(x, w1, b1, w2, b2, wr, br):
    """Pure-JAX f32 NCHW reference mirroring the PyTorch module."""
    def conv(x, w, b, pad):
        y = lax.conv_general_dilated(
            x, w, window_strides=(1, 1), padding=pad,
            dimension_numbers=('NCHW', 'OIHW', 'NCHW'))
        return y + b[None, :, None, None]

    y = _leaky_relu(conv(x, w1, b1, ((1, 1), (1, 1))))
    y = _leaky_relu(conv(y, w2, b2, ((1, 1), (1, 1))))
    r = conv(x, wr, br, ((0, 0), (0, 0)))
    return y + r


if __name__ == "__main__":
    key = jax.random.PRNGKey(0)
    B, Cin, Cout, H, W = 2, 4, 8, 16, 16

    ks = jax.random.split(key, 7)
    x = jax.random.normal(ks[0], (B, Cin, H, W), jnp.float32)
    # Deterministic synthetic parameters (PyTorch weight shapes).
    w1 = 0.1 * jax.random.normal(ks[1], (Cout, Cin, 3, 3), jnp.float32)
    b1 = 0.1 * jax.random.normal(ks[2], (Cout,), jnp.float32)
    w2 = 0.1 * jax.random.normal(ks[3], (Cout, Cout, 3, 3), jnp.float32)
    b2 = 0.1 * jax.random.normal(ks[4], (Cout,), jnp.float32)
    wr = 0.1 * jax.random.normal(ks[5], (Cout, Cin, 1, 1), jnp.float32)
    br = 0.1 * jax.random.normal(ks[6], (Cout,), jnp.float32)

    out = jax.block_until_ready(conv_block_pallas(x, w1, b1, w2, b2, wr, br))
    ref = jax.block_until_ready(conv_block_reference(x, w1, b1, w2, b2, wr, br))

    assert out.shape == ref.shape == (B, Cout, H, W)
    max_err = float(jnp.max(jnp.abs(out - ref)))
    # bf16 inputs/weights with f32 accumulation vs a pure-f32 reference.
    assert max_err < 7.5e-2, f"mismatch vs reference (max abs err {max_err})"

    print("KERNEL_OK")
</pallas_src>

<mosaic_0001>
module attributes {stable_mosaic.version = 11 : i64} {
  func.func @conv_block_kernel(%arg0: i32, %arg1: memref<1x18x72xbf16, #tpu.memory_space<vmem>>, %arg2: memref<3x72x144xbf16, #tpu.memory_space<vmem>>, %arg3: memref<1x144xf32, #tpu.memory_space<vmem>>, %arg4: memref<3x144x128xbf16, #tpu.memory_space<vmem>>, %arg5: memref<1x128xf32, #tpu.memory_space<vmem>>, %arg6: memref<72x128xbf16, #tpu.memory_space<vmem>>, %arg7: memref<1x128xf32, #tpu.memory_space<vmem>>, %arg8: memref<1x16x128xf32, #tpu.memory_space<vmem>>, %arg9: memref<18x144xbf16, #tpu.memory_space<vmem>>) attributes {dimension_semantics = [#tpu.dimension_semantics<parallel>], iteration_bounds = array<i64: 2>, scalar_prefetch = 0 : i64, scratch_operands = 1 : i64, tpu.core_type = #tpu.core_type<tc>, window_params = [{transform_indices = @transform_0, window_bounds = array<i64: 1, 18, 72>}, {pipeline_mode = #tpu.pipeline_mode<synchronous>, transform_indices = @transform_1, window_bounds = array<i64: 3, 72, 144>}, {pipeline_mode = #tpu.pipeline_mode<synchronous>, transform_indices = @transform_2, window_bounds = array<i64: 1, 144>}, {pipeline_mode = #tpu.pipeline_mode<synchronous>, transform_indices = @transform_3, window_bounds = array<i64: 3, 144, 128>}, {pipeline_mode = #tpu.pipeline_mode<synchronous>, transform_indices = @transform_4, window_bounds = array<i64: 1, 128>}, {pipeline_mode = #tpu.pipeline_mode<synchronous>, transform_indices = @transform_5, window_bounds = array<i64: 72, 128>}, {pipeline_mode = #tpu.pipeline_mode<synchronous>, transform_indices = @transform_6, window_bounds = array<i64: 1, 128>}, {transform_indices = @transform_7, window_bounds = array<i64: 1, 16, 128>}]} {
    %c0 = arith.constant 0 : index
    %c0_0 = arith.constant 0 : index
    %c0_1 = arith.constant 0 : index
    %0 = vector.load %arg1[%c0, %c0_0, %c0_1] : memref<1x18x72xbf16, #tpu.memory_space<vmem>>, vector<1x18x72xbf16>
    %1 = vector.shape_cast %0 : vector<1x18x72xbf16> to vector<18x72xbf16>
    %2 = vector.extract_strided_slice %1 {offsets = [0, 0], sizes = [16, 72], strides = [1, 1]} : vector<18x72xbf16> to vector<16x72xbf16>
    %c0_2 = arith.constant 0 : index
    %c0_3 = arith.constant 0 : index
    %c0_4 = arith.constant 0 : index
    %3 = vector.load %arg2[%c0_2, %c0_3, %c0_4] : memref<3x72x144xbf16, #tpu.memory_space<vmem>>, vector<1x72x144xbf16>
    %4 = vector.shape_cast %3 : vector<1x72x144xbf16> to vector<72x144xbf16>
    %cst = arith.constant dense<0.000000e+00> : vector<16x144xf32>
    %5 = tpu.matmul %2, %4, %cst {dimension_numbers = #tpu.dot_dimension_numbers<[1], [0], [0], [1], [0, 0, 1, 1], [], []>} : vector<16x72xbf16>, vector<72x144xbf16>, vector<16x144xf32> -> vector<16x144xf32>
    %6 = vector.extract_strided_slice %1 {offsets = [1, 0], sizes = [16, 72], strides = [1, 1]} : vector<18x72xbf16> to vector<16x72xbf16>
    %c1 = arith.constant 1 : index
    %c0_5 = arith.constant 0 : index
    %c0_6 = arith.constant 0 : index
    %7 = vector.load %arg2[%c1, %c0_5, %c0_6] : memref<3x72x144xbf16, #tpu.memory_space<vmem>>, vector<1x72x144xbf16>
    %8 = vector.shape_cast %7 : vector<1x72x144xbf16> to vector<72x144xbf16>
    %cst_7 = arith.constant dense<0.000000e+00> : vector<16x144xf32>
    %9 = tpu.matmul %6, %8, %cst_7 {dimension_numbers = #tpu.dot_dimension_numbers<[1], [0], [0], [1], [0, 0, 1, 1], [], []>} : vector<16x72xbf16>, vector<72x144xbf16>, vector<16x144xf32> -> vector<16x144xf32>
    %10 = arith.addf %5, %9 : vector<16x144xf32>
    %11 = vector.extract_strided_slice %1 {offsets = [2, 0], sizes = [16, 72], strides = [1, 1]} : vector<18x72xbf16> to vector<16x72xbf16>
    %c2 = arith.constant 2 : index
    %c0_8 = arith.constant 0 : index
    %c0_9 = arith.constant 0 : index
    %12 = vector.load %arg2[%c2, %c0_8, %c0_9] : memref<3x72x144xbf16, #tpu.memory_space<vmem>>, vector<1x72x144xbf16>
    %13 = vector.shape_cast %12 : vector<1x72x144xbf16> to vector<72x144xbf16>
    %cst_10 = arith.constant dense<0.000000e+00> : vector<16x144xf32>
    %14 = tpu.matmul %11, %13, %cst_10 {dimension_numbers = #tpu.dot_dimension_numbers<[1], [0], [0], [1], [0, 0, 1, 1], [], []>} : vector<16x72xbf16>, vector<72x144xbf16>, vector<16x144xf32> -> vector<16x144xf32>
    %15 = arith.addf %10, %14 : vector<16x144xf32>
    %c0_11 = arith.constant 0 : index
    %c0_12 = arith.constant 0 : index
    %16 = vector.load %arg3[%c0_11, %c0_12] : memref<1x144xf32, #tpu.memory_space<vmem>>, vector<1x144xf32>
    %17 = vector.broadcast %16 : vector<1x144xf32> to vector<16x144xf32>
    %18 = arith.addf %15, %17 : vector<16x144xf32>
    %cst_13 = arith.constant 0.000000e+00 : f32
    %19 = vector.broadcast %cst_13 : f32 to vector<16x144xf32>
    %20 = arith.cmpf ogt, %18, %19 : vector<16x144xf32>
    %cst_14 = arith.constant 0.00999999977 : f32
    %21 = vector.broadcast %cst_14 : f32 to vector<16x144xf32>
    %22 = arith.mulf %21, %18 : vector<16x144xf32>
    %23 = arith.select %20, %18, %22 : vector<16x144xi1>, vector<16x144xf32>
    %cst_15 = arith.constant 0.000000e+00 : bf16
    %24 = vector.broadcast %cst_15 : bf16 to vector<1x144xbf16>
    %c0_16 = arith.constant 0 : index
    %c0_17 = arith.constant 0 : index
    %25 = vector.load %arg9[%c0_16, %c0_17] : memref<18x144xbf16, #tpu.memory_space<vmem>>, vector<1x144xbf16>
    tpu.vector_store %arg9[%c0_16, %c0_17], %24 {strides = array<i32>} : memref<18x144xbf16, #tpu.memory_space<vmem>>, vector<1x144xbf16>,
    %c17 = arith.constant 17 : index
    %c0_18 = arith.constant 0 : index
    %26 = vector.load %arg9[%c17, %c0_18] : memref<18x144xbf16, #tpu.memory_space<vmem>>, vector<1x144xbf16>
    tpu.vector_store %arg9[%c17, %c0_18], %24 {strides = array<i32>} : memref<18x144xbf16, #tpu.memory_space<vmem>>, vector<1x144xbf16>,
    %27 = arith.truncf %23 : vector<16x144xf32> to vector<16x144xbf16>
    %c1_19 = arith.constant 1 : index
    %c0_20 = arith.constant 0 : index
    %28 = vector.load %arg9[%c1_19, %c0_20] : memref<18x144xbf16, #tpu.memory_space<vmem>>, vector<16x144xbf16>
    tpu.vector_store %arg9[%c1_19, %c0_20], %27 {strides = array<i32>} : memref<18x144xbf16, #tpu.memory_space<vmem>>, vector<16x144xbf16>,
    %c0_21 = arith.constant 0 : index
    %c0_22 = arith.constant 0 : index
    %29 = vector.load %arg9[%c0_21, %c0_22] : memref<18x144xbf16, #tpu.memory_space<vmem>>, vector<16x144xbf16>
    %c0_23 = arith.constant 0 : index
    %c0_24 = arith.constant 0 : index
    %c0_25 = arith.constant 0 : index
    %30 = vector.load %arg4[%c0_23, %c0_24, %c0_25] : memref<3x144x128xbf16, #tpu.memory_space<vmem>>, vector<1x144x128xbf16>
    %31 = vector.shape_cast %30 : vector<1x144x128xbf16> to vector<144x128xbf16>
    %cst_26 = arith.constant dense<0.000000e+00> : vector<16x128xf32>
    %32 = tpu.matmul %29, %31, %cst_26 {dimension_numbers = #tpu.dot_dimension_numbers<[1], [0], [0], [1], [0, 0, 1, 1], [], []>} : vector<16x144xbf16>, vector<144x128xbf16>, vector<16x128xf32> -> vector<16x128xf32>
    %c1_27 = arith.constant 1 : index
    %c0_28 = arith.constant 0 : index
    %33 = vector.load %arg9[%c1_27, %c0_28] : memref<18x144xbf16, #tpu.memory_space<vmem>>, vector<16x144xbf16>
    %c1_29 = arith.constant 1 : index
    %c0_30 = arith.constant 0 : index
    %c0_31 = arith.constant 0 : index
    %34 = vector.load %arg4[%c1_29, %c0_30, %c0_31] : memref<3x144x128xbf16, #tpu.memory_space<vmem>>, vector<1x144x128xbf16>
    %35 = vector.shape_cast %34 : vector<1x144x128xbf16> to vector<144x128xbf16>
    %cst_32 = arith.constant dense<0.000000e+00> : vector<16x128xf32>
    %36 = tpu.matmul %33, %35, %cst_32 {dimension_numbers = #tpu.dot_dimension_numbers<[1], [0], [0], [1], [0, 0, 1, 1], [], []>} : vector<16x144xbf16>, vector<144x128xbf16>, vector<16x128xf32> -> vector<16x128xf32>
    %37 = arith.addf %32, %36 : vector<16x128xf32>
    %c2_33 = arith.constant 2 : index
    %c0_34 = arith.constant 0 : index
    %38 = vector.load %arg9[%c2_33, %c0_34] : memref<18x144xbf16, #tpu.memory_space<vmem>>, vector<16x144xbf16>
    %c2_35 = arith.constant 2 : index
    %c0_36 = arith.constant 0 : index
    %c0_37 = arith.constant 0 : index
    %39 = vector.load %arg4[%c2_35, %c0_36, %c0_37] : memref<3x144x128xbf16, #tpu.memory_space<vmem>>, vector<1x144x128xbf16>
    %40 = vector.shape_cast %39 : vector<1x144x128xbf16> to vector<144x128xbf16>
    %cst_38 = arith.constant dense<0.000000e+00> : vector<16x128xf32>
    %41 = tpu.matmul %38, %40, %cst_38 {dimension_numbers = #tpu.dot_dimension_numbers<[1], [0], [0], [1], [0, 0, 1, 1], [], []>} : vector<16x144xbf16>, vector<144x128xbf16>, vector<16x128xf32> -> vector<16x128xf32>
    %42 = arith.addf %37, %41 : vector<16x128xf32>
    %c0_39 = arith.constant 0 : index
    %c0_40 = arith.constant 0 : index
    %43 = vector.load %arg5[%c0_39, %c0_40] : memref<1x128xf32, #tpu.memory_space<vmem>>, vector<1x128xf32>
    %44 = vector.broadcast %43 : vector<1x128xf32> to vector<16x128xf32>
    %45 = arith.addf %42, %44 : vector<16x128xf32>
    %cst_41 = arith.constant 0.000000e+00 : f32
    %46 = vector.broadcast %cst_41 : f32 to vector<16x128xf32>
    %47 = arith.cmpf ogt, %45, %46 : vector<16x128xf32>
    %cst_42 = arith.constant 0.00999999977 : f32
    %48 = vector.broadcast %cst_42 : f32 to vector<16x128xf32>
    %49 = arith.mulf %48, %45 : vector<16x128xf32>
    %50 = arith.select %47, %45, %49 : vector<16x128xi1>, vector<16x128xf32>
    %51 = vector.extract_strided_slice %1 {offsets = [1, 0], sizes = [16, 72], strides = [1, 1]} : vector<18x72xbf16> to vector<16x72xbf16>
    %c0_43 = arith.constant 0 : index
    %c0_44 = arith.constant 0 : index
    %52 = vector.load %arg6[%c0_43, %c0_44] : memref<72x128xbf16, #tpu.memory_space<vmem>>, vector<72x128xbf16>
    %cst_45 = arith.constant dense<0.000000e+00> : vector<16x128xf32>
    %53 = tpu.matmul %51, %52, %cst_45 {dimension_numbers = #tpu.dot_dimension_numbers<[1], [0], [0], [1], [0, 0, 1, 1], [], []>} : vector<16x72xbf16>, vector<72x128xbf16>, vector<16x128xf32> -> vector<16x128xf32>
    %c0_46 = arith.constant 0 : index
    %c0_47 = arith.constant 0 : index
    %54 = vector.load %arg7[%c0_46, %c0_47] : memref<1x128xf32, #tpu.memory_space<vmem>>, vector<1x128xf32>
    %55 = vector.broadcast %54 : vector<1x128xf32> to vector<16x128xf32>
    %56 = arith.addf %53, %55 : vector<16x128xf32>
    %57 = arith.addf %50, %56 : vector<16x128xf32>
    %c0_48 = arith.constant 0 : index
    %c0_49 = arith.constant 0 : index
    %c0_50 = arith.constant 0 : index
    %58 = vector.load %arg8[%c0_48, %c0_49, %c0_50] : memref<1x16x128xf32, #tpu.memory_space<vmem>>, vector<1x16x128xf32>
    %59 = vector.shape_cast %58 : vector<1x16x128xf32> to vector<16x128xf32>
    %60 = vector.shape_cast %57 : vector<16x128xf32> to vector<1x16x128xf32>
    tpu.vector_store %arg8[%c0_48, %c0_49, %c0_50], %60 {strides = array<i32>} : memref<1x16x128xf32, #tpu.memory_space<vmem>>, vector<1x16x128xf32>,
    return
  }
  func.func @transform_0(%arg0: i32) -> (i32, i32, i32) {
    %c0_i32 = arith.constant 0 : i32
    %c0_i32_0 = arith.constant 0 : i32
    %c0_i32_1 = arith.constant 0 : i32
    return %arg0, %c0_i32, %c0_i32_0 : i32, i32, i32
  }
  func.func @transform_1(%arg0: i32) -> (i32, i32, i32) {
    %c0_i32 = arith.constant 0 : i32
    %c0_i32_0 = arith.constant 0 : i32
    %c0_i32_1 = arith.constant 0 : i32
    %c0_i32_2 = arith.constant 0 : i32
    return %c0_i32, %c0_i32_0, %c0_i32_1 : i32, i32, i32
  }
  func.func @transform_2(%arg0: i32) -> (i32, i32) {
    %c0_i32 = arith.constant 0 : i32
    %c0_i32_0 = arith.constant 0 : i32
    %c0_i32_1 = arith.constant 0 : i32
    return %c0_i32, %c0_i32_0 : i32, i32
  }
  func.func @transform_3(%arg0: i32) -> (i32, i32, i32) {
    %c0_i32 = arith.constant 0 : i32
    %c0_i32_0 = arith.constant 0 : i32
    %c0_i32_1 = arith.constant 0 : i32
    %c0_i32_2 = arith.constant 0 : i32
    return %c0_i32, %c0_i32_0, %c0_i32_1 : i32, i32, i32
  }
  func.func @transform_4(%arg0: i32) -> (i32, i32) {
    %c0_i32 = arith.constant 0 : i32
    %c0_i32_0 = arith.constant 0 : i32
    %c0_i32_1 = arith.constant 0 : i32
    return %c0_i32, %c0_i32_0 : i32, i32
  }
  func.func @transform_5(%arg0: i32) -> (i32, i32) {
    %c0_i32 = arith.constant 0 : i32
    %c0_i32_0 = arith.constant 0 : i32
    %c0_i32_1 = arith.constant 0 : i32
    return %c0_i32, %c0_i32_0 : i32, i32
  }
  func.func @transform_6(%arg0: i32) -> (i32, i32) {
    %c0_i32 = arith.constant 0 : i32
    %c0_i32_0 = arith.constant 0 : i32
    %c0_i32_1 = arith.constant 0 : i32
    return %c0_i32, %c0_i32_0 : i32, i32
  }
  func.func @transform_7(%arg0: i32) -> (i32, i32, i32) {
    %c0_i32 = arith.constant 0 : i32
    %c0_i32_0 = arith.constant 0 : i32
    %c0_i32_1 = arith.constant 0 : i32
    return %arg0, %c0_i32, %c0_i32_0 : i32, i32, i32
  }
}

</mosaic_0001>

<bundles_post_ra>
// kernel: tpu_custom_call.1
= control target key start
LH: loop header
LB: loop body
LE: loop exit
PB: predicated region body
PF: predicated region fallthrough
CT: control target
= control target key end

     0   :  { %12 = vsyncpa [#allocation4], 0  ;;  %s2140_s0 = inlined_call_operand.vmem [shape: bf16[2,18,72], index: 0, kind: input, shape index: {}]   ;;  %s2141_s1 = inlined_call_operand.hbm [shape: bf16[3,72,144], index: 1, kind: input, shape index: {}]   ;;  %s2142_s2 = inlined_call_operand.vmem [shape: f32[1,144], index: 2, kind: input, shape index: {}]   ;;  %s2143_s3 = inlined_call_operand.hbm [shape: bf16[3,144,128], index: 3, kind: input, shape index: {}]   ;;  %s2144_s4 = inlined_call_operand.vmem [shape: f32[1,128], index: 4, kind: input, shape index: {}]   ;;  %s2145_s5 = inlined_call_operand.vmem [shape: bf16[72,128], index: 5, kind: input, shape index: {}]   ;;  %s2146_s6 = inlined_call_operand.vmem [shape: f32[1,128], index: 6, kind: input, shape index: {}]   ;;  %s2147_s7 = inlined_call_operand.hbm [shape: f32[2,16,128], index: 7, kind: output, shape index: {}]  }
   0x1   :  { %13 = vsyncpa [#allocation7], 0 }
   0x2   :  { %14 = vsyncpa [#allocation5], 0 }
   0x3   :  { %16 = vsyncpa [#allocation5 + $0x1], 0  ;;  %s1824_s24 = smov 0   ;;  %s1826_s25 = smov 0  }
   0x4   :  { %s1828_s26 = smov 0   ;;  %s1830_s27 = smov 0  }
   0x5 LB: > { %s1845_s28 = sadd.s32 4294967295, %s1770_s27   ;;  %s1364_s29 = sadd.s32 4294967294, %s1770_s27   ;;  %s1770_s27 = sphi %s1830_s27, %s2177_s27   ;;  %s1766_s26 = sphi %s1828_s26, %s2176_s26   ;;  %s1762_s25 = sphi %s1826_s25, %s2175_s25   ;;  %s1758_s24 = sphi %s1824_s24, %s2174_s24  }
   0x6   : > { %s1849_s30 = sadd.s32 1, %s1770_s27   ;;  %s181_s8 = sadd.s32 1, %s1766_s26 }
   0x7   : > { %s178_s9 = ssub.s32 %s1770_s27, %s1849_s30  ;;  %p191_p0 = scmp.ne.s32.totalorder %s1766_s26, %s1762_s25 }
   0x8   : > { %p179_p1 = scmp.eq.s32.totalorder %s178_s9, 0  ;;  %p192_p2 = scmp.eq.s32.totalorder %s1845_s28, 1 }
   0x9   : > { %p197_p3 = scmp.ne.s32.totalorder %s1762_s25, %s1758_s24  ;;  %p198_p4 = scmp.eq.s32.totalorder %s1364_s29, 1 }
   0xa   : > { %s1860_s10 = scalar_select %p179_p1, %s1766_s26, %s181_s8  }
   0xb   : > { %p1862_p5 = por %p192_p2, %p191_p0  ;;  %p1866_p6 = por %p198_p4, %p197_p3 }
   0xc   : > { %2152 = sst [smem:[#allocation12_spill]] %s1860_s10  ;;  %p1365_p7 = scmp.ge.s32.totalorder %s1770_s27, 1 }
   0xd   : > { %s2153_s11 = scalar_select %p1862_p5, 1, 0 }
   0xe   : > { %s2154_s12 = scalar_select %p1866_p6, 1, 0 }
   0xf   : > { %p205_p8 = scmp.lt.s32.totalorder %s1770_s27, 3  ;;  %p2148_p9 = scmp.eq.s32.totalorder %s1845_s28, 0 }
  0x10   : > { %s1772_s14 = smov [#allocation3]   ;;  %s1773_s17 = smov [#allocation6]  }
  0x11   : > { %p1873_p10 = pnand %p1365_p7, %p205_p8  ;;  %s217_s15 = sshll.u32 %s1772_s14, 4  ;;  %s218_s15 = int_to_ptr.vmem [resolvable:$true] %s217_s15 }
  0x12   : > { %s233_s18 = sshll.u32 %s1773_s17, 4  ;;  %s1644_s21 = scalar_lea.hbm %s2141_s1, 3456  ;;  %s1885_s18 = int_to_ptr.vmem [resolvable:$true] %s233_s18 }
  0x13   : > { %s2155_s13 = scalar_select %p1873_p10, 1, 0 }
  0x14   : > { %p1505_p11 = pneg %p1873_p10  ;;  %p1645_p13 = scmp.ne.s32.totalorder %s2141_s1, %s1644_s21 }
  0x15   : > { %p1651_p3 = scmp.lt.u32.totalorder %s1644_s21, %s2141_s1 }
  0x16   : > { %p1881_p12 = pnand %p2148_p9, %p1505_p11 }
  0x18   : > { %p1646_p0 = pneg %p1881_p12 }
  0x1a   : > { %p1647_p1 = pnand %p1646_p0, %p1645_p13 }
  0x1c   : > { %p1648_p2 = pneg %p1647_p1 }
  0x1e   : > { %p1653_p4 = pnand %p1651_p3, %p1648_p2 }
  0x20   : > { %1656 = shalt.err (!%p1653_p4)
}
  0x21   : > { %s1657_s9 = scalar_lea.vmem %s218_s15, 3456  ;;  %p1665_p9 = scmp.lt.s32.totalorder %s218_s15, %s218_s15 }
  0x22   : > { %p1658_p7 = scmp.ne.s32.totalorder %s218_s15, %s1657_s9  ;;  %p1666_p6 = scmp.lt.s32.totalorder %s1657_s9, %s1657_s9 }
  0x24   : > { %p1660_p8 = pnand %p1658_p7, %p1646_p0  ;;  %p1667_p5 = por %p1666_p6, %p1665_p9 }
  0x26   : > { %p1661_p11 = pneg %p1660_p8 }
  0x28   : > { %p1668_p10 = pnand %p1667_p5, %p1661_p11 }
  0x2a   : > { %1671 = shalt.err (!%p1668_p10)
}
  0x2b   : > { %s1774_s14 = smov 128   ;;  %s1775_s17 = smov 8  }
  0x2c   : > { %1508 = dma.hbm_to_vmem [thread:$0]  (!%p1881_p12), %s2141_s1, 3456, %s218_s15, [#allocation4], %s1774_s14, %s1774_s14, %s1775_s17  }
  0x2d   : > { %s1672_s23 = scalar_lea.hbm %s2143_s3, 3456 }
  0x2e   : > { %p1673_p13 = scmp.ne.s32.totalorder %s2143_s3, %s1672_s23  ;;  %p1679_p9 = scmp.lt.u32.totalorder %s1672_s23, %s2143_s3 }
  0x30   : > { %p1675_p5 = pnand %p1673_p13, %p1646_p0 }
  0x32   : > { %p1676_p6 = pneg %p1675_p5 }
  0x34   : > { %p1681_p10 = pnand %p1679_p9, %p1676_p6 }
  0x36   : > { %1684 = shalt.err (!%p1681_p10)
}
  0x37   : > { %s1685_s15 = scalar_lea.vmem %s1885_s18, 3456  ;;  %p1693_p4 = scmp.lt.s32.totalorder %s1885_s18, %s1885_s18 }
  0x38   : > { %p1686_p1 = scmp.ne.s32.totalorder %s1885_s18, %s1685_s15  ;;  %p1694_p7 = scmp.lt.s32.totalorder %s1685_s15, %s1685_s15 }
  0x3a   : > { %p1688_p2 = pnand %p1686_p1, %p1646_p0  ;;  %p1695_p8 = por %p1694_p7, %p1693_p4 }
  0x3c   : > { %p1689_p3 = pneg %p1688_p2 }
  0x3e   : > { %p1696_p11 = pnand %p1695_p8, %p1689_p3 }
  0x40   : > { %1699 = shalt.err (!%p1696_p11)
}
  0x41   : > { %s1776_s10 = smov 64   ;;  %s1777_s14 = smov 4  }
  0x42   : > { %1511 = dma.hbm_to_vmem [thread:$0]  (!%p1881_p12), %s2143_s3, 3456, %s1885_s18, [#allocation7], %s1776_s10, %s1776_s10, %s1777_s14  }
  0x43   : > { %p2157_p13 = scmp.ne.s32.totalorder %s2155_s13, 0 }
  0x44   : > { %p2158_p0 = scmp.eq.s32.totalorder (!%p2157_p13), %s1845_s28, 0 }
  0x45   : > { %266 = sbr.rel (%p2157_p13) target bundleno = 679 (0x2a7), region = 48 }
  0x4c   : > { %1745 = dma.done.wait (%p2158_p0), [#allocation4], 3456   ;;  %p2159_p5 = pmov %p2158_p0 }
  0x4d   : > { %p2160_p6 = pmov %p2158_p0 }
  0x4e   : > { %1747 = vsyncadd (%p2159_p5), [#allocation4], 4294963840 }
  0x4f   : > { %1749 = dma.done.wait (%p2160_p6), [#allocation7], 3456   ;;  %p2161_p9 = pmov %p2158_p0 }
  0x50   : > { %p302_p10 = scmp.lt.s32.totalorder %s1845_s28, 1  ;;  %v1778_v0 = vmov 0   ;;  %v1564_v1 = vld [vmem:[#allocation3 + $0x4c] ss:$8 sps:$4 sm:$0xff]   ;;  %v1566_v2 = vld [vmem:[#allocation3 + $0x48] ss:$8 sps:$4 sm:$0xff]  }
  0x51   : > { %1751 = vsyncadd (%p2161_p9), [#allocation7], 4294963840  ;;  %439 = vmatprep.mubr.bf16.mxu0 %v1778_v0  ;;  %889 = vmatprep.subr.bf16.mxu1 %v1778_v0  ;;  %v1567_v3 = vld [vmem:[#allocation3 + $0x5c] ss:$8 sps:$4 sm:$0xff]   ;;  %v1569_v4 = vld [vmem:[#allocation3 + $0x58] ss:$8 sps:$4 sm:$0xff]  }
  0x52   : > { %s303_s13 = scalar_select %p302_p10, %s1845_s28, 1  ;;  %407 = vmatprep.subr.bf16.mxu0 %v1564_v1  ;;  %v1570_v5 = vld [vmem:[#allocation3 + $0x6c] ss:$8 sps:$4 sm:$0xff]   ;;  %v1572_v6 = vld [vmem:[#allocation3 + $0x68] ss:$8 sps:$4 sm:$0xff]   ;;  %vm400_vm0 = vcmask 1043456  }
  0x53   : > { %408 = vmatpush1.bf16.msra.mxu0 %v1566_v2  ;;  %v1573_v7 = vld [vmem:[#allocation3 + $0x7c] ss:$8 sps:$4 sm:$0xff]   ;;  %v329_v10 = vld [vmem:[#allocation3 + $0x88] sm:$0xff]  ;;  %v1575_v12 = vld [vmem:[#allocation3 + $0x78] ss:$8 sps:$4 sm:$0xff]   ;;  %vm2151_vm2 = vcmask 588800  }
  0x54   : > { %s1494_s16 = smul.u32 12, %s303_s13  ;;  %409 = vmatprep.subr.bf16.mxu0 %v1567_v3  ;;  %v1385_v15 = vcombine.high %v329_v10, %v329_v10  ;;  %v1384_v16 = vcombine.low %v329_v10, %v329_v10  ;;  %v319_v18 = vld [vmem:[#allocation3 + $0x40] sm:$0xff]  ;;  %vm338_vm1 = vsmask.f32 7424  ;;  %v1585_v26 = vld [vmem:[#allocation3 + $0x14] ss:$8 sps:$4 sm:$0xff]  }
  0x55   : > { %v1580_v22 = vld [vmem:[#allocation3 + $0x4] ss:$8 sps:$4 sm:$0xff]   ;;  %v1396_v23 = vcombine.low %v319_v18, %v319_v18  ;;  %v1578_v24 = vld [vmem:[#allocation3] ss:$8 sps:$4 sm:$0xff]   ;;  %v1583_v27 = vld [vmem:[#allocation3 + $0x10] ss:$8 sps:$4 sm:$0xff]   ;;  %v1397_v33 = vcombine.high %v319_v18, %v319_v18 }
  0x56   : > { %s306_s21 = scalar_lea.vmem %s2140_s0, %s1494_s16  ;;  %v402_v21 = vsel %vm400_vm0, %v1384_v16, 0  ;;  %v1588_v29 = vld [vmem:[#allocation3 + $0x24] ss:$8 sps:$4 sm:$0xff]   ;;  %v1586_v30 = vld [vmem:[#allocation3 + $0x20] ss:$8 sps:$4 sm:$0xff]   ;;  %v555_v41 = vld [vmem:[#allocation3 + $0xd0] sm:$0xff] }
  0x57   : > { %410 = vmatpush1.bf16.msra.mxu0 %v1569_v4  ;;  %v1951_v8 = vld [vmem:[%s306_s21] sm:$0xff]   ;;  %v1953_v9 = vld [vmem:[%s306_s21 + $0x8] ss:$0 sps:$4 sm:$0x11]   ;;  %v498_v28 = vsel %vm400_vm0, %v1396_v23, 0  ;;  %v1409_v43 = vcombine.high %v555_v41, %v555_v41  ;;  %v1408_v44 = vcombine.low %v555_v41, %v555_v41  ;;  %vm556_vm3 = vcmask 1046528  }
  0x58   : > { %411 = vmatprep.subr.bf16.mxu0 %v1570_v5  ;;  %v342_v11 = vshll.u32 %v1951_v8, 16  ;;  %v340_v13 = vshrl.u32 %v1951_v8, 16  ;;  %v347_v14 = vshll.u32 %v1953_v9, 16  ;;  %v1591_v31 = vld [vmem:[#allocation3 + $0x34] ss:$8 sps:$4 sm:$0xff]   ;;  %v557_v45 = vrot.slane %v1951_v8, 1 }
  0x59   : > { %v1589_v32 = vld [vmem:[#allocation3 + $0x30] ss:$8 sps:$4 sm:$0xff]   ;;  %v1596_v34 = vld [vmem:[#allocation3 + $0x94] ss:$8 sps:$4 sm:$0xff]   ;;  %v1599_v36 = vld [vmem:[#allocation3 + $0xa4] ss:$8 sps:$4 sm:$0xff]  }
  0x5a   : > { %v344_v17 = vrot.slane %v342_v11, 1  ;;  %v349_v20 = vrot.slane %v347_v14, 1  ;;  %v1594_v35 = vld [vmem:[#allocation3 + $0x90] ss:$8 sps:$4 sm:$0xff]   ;;  %v1597_v37 = vld [vmem:[#allocation3 + $0xa0] ss:$8 sps:$4 sm:$0xff]  }
  0x5b   : > { %412 = vmatpush1.bf16.msra.mxu0 %v1572_v6  ;;  %v1602_v38 = vld [vmem:[#allocation3 + $0xb4] ss:$8 sps:$4 sm:$0xff]   ;;  %v1600_v39 = vld [vmem:[#allocation3 + $0xb0] ss:$8 sps:$4 sm:$0xff]   ;;  %v1605_v40 = vld [vmem:[#allocation3 + $0xc4] ss:$8 sps:$4 sm:$0xff]  }
  0x5c   : > { %413 = vmatprep.subr.bf16.mxu0 %v1573_v7  ;;  %v345_v19 = vor.u32 %v344_v17, %v340_v13  ;;  %v1603_v42 = vld [vmem:[#allocation3 + $0xc0] ss:$8 sps:$4 sm:$0xff]   ;;  %v558_v46 = vrot.slane %v1953_v9, 1  ;;  %v609_v47 = vsel %vm400_vm0, %v1408_v44, 0  ;;  %v1610_v51 = vld [vmem:[#allocation6 + $0x98] sm:$0xff]   ;;  %vm689_vm4 = vcmask 1040384  }
  0x5d   : > { %v1608_v49 = vld [vmem:[#allocation6 + $0x90] sm:$0xff]   ;;  %v1609_v50 = vld [vmem:[#allocation6 + $0x48] sm:$0xff]   ;;  %vm690_vm5 = vsmask.f32 256  ;;  %vm692_vm6 = vcmask 126980   ;;  %v1612_v54 = vld [vmem:[#allocation6 + $0xa0] sm:$0xff]  }
  0x5e   : > { %v1961_v25 = vsel %vm338_vm1, %v345_v19, %v349_v20  ;;  %v559_v48 = vsel %vm556_vm3, %v557_v45, %v558_v46  ;;  %890 = vmatpush1.bf16.msra.mxu1 %v1609_v50  ;;  %v1611_v52 = vld [vmem:[#allocation6 + $0x50] sm:$0xff]   ;;  %vm693_vm7 = vsmask.f32 4352  ;;  %vm1983_vm8 = vmand %vm689_vm4, %vm690_vm5  ;;  %vm699_vm10 = vsmask.f32 7938  ;;  %v1613_v57 = vld [vmem:[#allocation6 + $0x58] sm:$0xff]  }
  0x5f   : > { %414 = vmatpush1.bf16.msra.mxu0 %v1575_v12  ;;  %891 = vmatprep.subr.bf16.mxu1 %v1778_v0  ;;  %vm1988_vm9 = vmand %vm692_vm6, %vm693_vm7  ;;  %v696_v56 = vld [vmem:[#allocation2] sm:$0x11]  ;;  %vm701_vm11 = vsmask.f32 7954  ;;  %v704_v59 = vld [vmem:[#allocation2 + $0x10] sm:$0x11]  ;;  %v663_v12 = vlaneseq }
  0x60   : > { %1386 = vmatprep.subr.msk.bf16.mxu0 %vm400_vm0, %v1385_v15  ;;  %vm695_vm12 = vmor %vm1988_vm9, %vm1983_vm8  ;;  %v1614_v60 = vld [vmem:[#allocation6 + $0xa8] sm:$0xff]   ;;  %v1615_v62 = vld [vmem:[#allocation6 + $0x60] sm:$0xff]   ;;  %s299_s21 = sand.u32 1, %s1762_s25   ;;  %s1465_s15 = sshll.u32 %s1845_s28, 8 }
  0x61   : > { %v697_v58 = vsel %vm695_vm12, 0, %v696_v56  ;;  %vm700_vm13 = vmand %vm689_vm4, %vm699_vm10  ;;  %v1616_v63 = vld [vmem:[#allocation6 + $0xb0] sm:$0xff]   ;;  %vm741_vm4 = vcmask 130052   ;;  %v1617_v3 = vld [vmem:[#allocation6 + $0x68] sm:$0xff]   ;;  %v664_v13 = vshrl.u32 %v663_v12, 7  ;;  %s1372_s22 = sshll.u32 %s299_s21, 4  ;;  %s2097_s17 = scalar_lea.hbm %s2147_s7, %s1465_s15 }
  0x62   : > { %892 = vmatpush1.bf16.msra.mxu1 %v1611_v52  ;;  %698 = vst [vmem:[#allocation2] sm:$0x11] %v697_v58  ;;  %vm702_vm14 = vmand %vm692_vm6, %vm701_vm11  ;;  %v1618_v4 = vld [vmem:[#allocation6 + $0xb8] sm:$0xff]   ;;  %v1619_v5 = vld [vmem:[#allocation6 + $0x70] sm:$0xff]   ;;  %s301_s8 = scalar_lea.vmem [#allocation8], %s1372_s22  ;;  %s2099_s28 = scalar_lea.sflag [#allocation5], %s299_s21 }
  0x63   : > { %416 = vmatpush1.bf16.msra.mxu0 %v402_v21  ;;  %893 = vmatprep.subr.bf16.mxu1 %v1778_v0  ;;  %vm703_vm15 = vmor %vm702_vm14, %vm700_vm13  ;;  %v1620_v6 = vld [vmem:[#allocation6 + $0xc0] sm:$0xff]   ;;  %v1621_v7 = vld [vmem:[#allocation6 + $0x78] sm:$0xff]   ;;  %v665_v14 = vsub.s32 0, %v664_v13  ;;  %v669_v16 = vsub.s32 1, %v664_v13  ;;  %s1280_s9 = sshll.u32 %s301_s8, 4  ;;  %p2171_p1 = scmp.ne.s32.totalorder %s2153_s11, 0  ;;  %s2092_s9 = int_to_ptr.vmem [resolvable:$true] %s1280_s9 }
  0x64   : > { %503 = vmatprep.subr.bf16.mxu0 %v1580_v22  ;;  %v705_v61 = vsel %vm703_vm15, 0, %v704_v59  ;;  %vm2011_vm7 = vmand %vm400_vm0, %vm699_vm10  ;;  %v1623_v9 = vld [vmem:[#allocation6 + $0x80] sm:$0xff]   ;;  %v1624_v10 = vld [vmem:[#allocation6 + $0xd0] sm:$0xff]   ;;  %s1700_s19 = scalar_lea.vmem %s2092_s9, 256  ;;  %s1781_s13 = smov [#allocation8]  }
  0x65   : > { %706 = vst [vmem:[#allocation2 + $0x10] sm:$0x11] %v705_v61  ;;  %vm2018_vm6 = vmand %vm741_vm4, %vm701_vm11  ;;  %v1627_v11 = vld [vmem:[#allocation6 + $0x88] sm:$0xff]   ;;  %p1701_p12 = scmp.ne.s32.totalorder %s2092_s9, %s1700_s19  ;;  %s1704_s16 = sshll.u32 %s1781_s13, 4  ;;  %s1705_s16 = int_to_ptr.vmem [resolvable:$false] %s1704_s16 }
  0x66   : > { %1387 = vmatmul.mubr.msk.bf16.vlgmr.msra.gmra.mrb[0].mxu0 %vm2151_vm2, %v1961_v25  ;;  %894 = vmatpush1.bf16.msra.mxu1 %v1613_v57  ;;  %vm743_vm13 = vmor %vm2018_vm6, %vm2011_vm7  ;;  %v661_v15 = vld [vmem:[%s2142_s2] sm:$0x3]  ;;  %s1706_s18 = scalar_lea.vmem %s1705_s16, 512  ;;  %p1707_p4 = scmp.lt.s32.totalorder %s2092_s9, %s1705_s16 }
  0x67   : > { %504 = vmatpush1.bf16.msra.mxu0 %v1578_v24  ;;  %535 = vmatprep.mubr.bf16.mxu0 %v1778_v0  ;;  %v666_v17 = vrot.slane %v661_v15, %v665_v14  ;;  %v670_v18 = vrot.slane %v661_v15, %v669_v16  ;;  %p1702_p2 = pnand %p1701_p12, %p2171_p1  ;;  %p1708_p7 = scmp.lt.s32.totalorder %s1706_s18, %s1700_s19 }
  0x68   : > { %505 = vmatprep.subr.bf16.mxu0 %v1585_v26  ;;  %895 = vmatprep.subr.bf16.mxu1 %v1778_v0 }
  0x69   : > { %p1703_p3 = pneg %p1702_p2  ;;  %p1709_p8 = por %p1708_p7, %p1707_p4 }
  0x6a   : > { %896 = vmatpush1.bf16.msra.mxu1 %v1615_v62 }
  0x6b   : > { %506 = vmatpush1.bf16.msra.mxu0 %v1583_v27  ;;  %897 = vmatprep.subr.bf16.mxu1 %v1778_v0  ;;  %p1710_p11 = pnand %p1709_p8, %p1703_p3 }
  0x6c   : > { %507 = vmatprep.subr.bf16.mxu0 %v1588_v29  ;;  %v750_v46 = vld [vmem:[#allocation2 + $0x10] sm:$0x11] }
  0x6e   : > { %898 = vmatpush1.bf16.msra.mxu1 %v1617_v3 }
  0x6f   : > { %508 = vmatpush1.bf16.msra.mxu0 %v1586_v30  ;;  %899 = vmatprep.subr.bf16.mxu1 %v1778_v0 }
  0x70   : > { %509 = vmatprep.subr.bf16.mxu0 %v1591_v31 }
  0x72   : > { %900 = vmatpush1.bf16.msra.mxu1 %v1619_v5 }
  0x73   : > { %510 = vmatpush1.bf16.msra.mxu0 %v1589_v32  ;;  %901 = vmatprep.subr.bf16.mxu1 %v1778_v0 }
  0x74   : > { %1398 = vmatprep.subr.msk.bf16.mxu0 %vm400_vm0, %v1397_v33 }
  0x76   : > { %902 = vmatpush1.bf16.msra.mxu1 %v1621_v7 }
  0x77   : > { %512 = vmatpush1.bf16.msra.mxu0 %v498_v28  ;;  %903 = vmatprep.subr.bf16.mxu1 %v1778_v0 }
  0x78   : > { %614 = vmatprep.subr.bf16.mxu0 %v1596_v34 }
  0x7a   : > { %1399 = vmatmul.mubr.msk.bf16.vlgmr.msra.gmra.mrb[0].mxu0 %vm2151_vm2, %v1951_v8  ;;  %v1622_v8 = vld [vmem:[#allocation6 + $0xc8] sm:$0xff]   ;;  %904 = vmatpush1.bf16.msra.mxu1 %v1623_v9 }
  0x7b   : > { %615 = vmatpush1.bf16.msra.mxu0 %v1594_v35  ;;  %646 = vmatprep.mubr.bf16.mxu0 %v1778_v0 }
  0x7c   : > { %616 = vmatprep.subr.bf16.mxu0 %v1599_v36  ;;  %905 = vmatprep.subr.bf16.mxu1 %v1778_v0 }
  0x7e   : > { %906 = vmatpush1.bf16.msra.mxu1 %v1627_v11 }
  0x7f   : > { %617 = vmatpush1.bf16.msra.mxu0 %v1597_v37  ;;  %987 = vmatprep.subr.bf16.mxu1 %v1778_v0 }
  0x80   : > { %618 = vmatprep.subr.bf16.mxu0 %v1602_v38 }
  0x83   : > { %619 = vmatpush1.bf16.msra.mxu0 %v1600_v39 }
  0x84   : > { %620 = vmatprep.subr.bf16.mxu0 %v1605_v40 }
  0x87   : > { %621 = vmatpush1.bf16.msra.mxu0 %v1603_v42  ;;  %v744_v42 = vld [vmem:[#allocation2] sm:$0xff] }
  0x88   : > { %1410 = vmatprep.subr.msk.bf16.mxu0 %vm400_vm0, %v1409_v43 }
  0x8b   : > { %623 = vmatpush1.bf16.msra.mxu0 %v609_v47 }
  0x8c   : > { %1117 = vmatprep.subr.bf16.mxu0 %v1778_v0 }
  0x8e   : > { %1411 = vmatmul.mubr.msk.bf16.vlgmr.msra.gmra.mrb[0].mxu0 %vm2151_vm2, %v559_v48  ;;  %vm717_vm2 = vsmask.f32 4368 }
  0x8f   : > { %1118 = vmatpush1.bf16.msra.mxu0 %v1608_v49 }
  0x90   : > { %1119 = vmatprep.subr.bf16.mxu0 %v1778_v0 }
  0x93   : > { %1120 = vmatpush1.bf16.msra.mxu0 %v1610_v51 }
  0x94   : > { %1121 = vmatprep.subr.bf16.mxu0 %v1778_v0 }
  0x97   : > { %1122 = vmatpush1.bf16.msra.mxu0 %v1612_v54 }
  0x98   : > { %1123 = vmatprep.subr.bf16.mxu0 %v1778_v0 }
  0x9b   : > { %1124 = vmatpush1.bf16.msra.mxu0 %v1614_v60 }
  0x9c   : > { %1125 = vmatprep.subr.bf16.mxu0 %v1778_v0 }
  0x9f   : > { %1126 = vmatpush1.bf16.msra.mxu0 %v1616_v63 }
  0xa0   : > { %1127 = vmatprep.subr.bf16.mxu0 %v1778_v0 }
  0xa3   : > { %1128 = vmatpush1.bf16.msra.mxu0 %v1618_v4 }
  0xa4   : > { %1129 = vmatprep.subr.bf16.mxu0 %v1778_v0 }
  0xa7   : > { %1130 = vmatpush1.bf16.msra.mxu0 %v1620_v6 }
  0xa8   : > { %1131 = vmatprep.subr.bf16.mxu0 %v1778_v0 }
  0xab   : > { %1132 = vmatpush1.bf16.msra.mxu0 %v1622_v8 }
  0xac   : > { %1133 = vmatprep.subr.bf16.mxu0 %v1778_v0 }
  0xaf   : > { %1134 = vmatpush1.bf16.msra.mxu0 %v1624_v10 }
 0x161   : > { %v648_v19 = vpop.f32.mrb[0].mxu0 }
 0x162   : > { %v673_v20 = vadd.f32 %v666_v17, %v648_v19  ;;  %v650_v21 = vpop.f32.mrb[1].mxu0 }
 0x163   : > { %v674_v22 = vadd.f32 %v670_v18, %v650_v21  ;;  %v652_v23 = vpop.f32.mrb[2].mxu0  ;;  %v1632_v21 = vld [vmem:[#allocation6 + $0x10] sm:$0xff]  }
 0x164   : > { %vm677_vm10 = vcmp.gt.f32.partialorder %v673_v20, 0.0  ;;  %v681_v24 = vmul.f32 0.01, %v673_v20  ;;  %v675_v26 = vadd.f32 %v666_v17, %v652_v23  ;;  %v654_v27 = vpop.f32.mrb[3].mxu0  ;;  %v1630_v17 = vld [vmem:[#allocation6] sm:$0xff]  }
 0x165   : > { %vm678_vm11 = vcmp.gt.f32.partialorder %v674_v22, 0.0  ;;  %v682_v28 = vmul.f32 0.01, %v674_v22  ;;  %v676_v29 = vadd.f32 %v670_v18, %v654_v27  ;;  %v1634_v23 = vld [vmem:[#allocation6 + $0x20] sm:$0xff]   ;;  %v1637_v27 = vld [vmem:[#allocation6 + $0x38] sm:$0xff]  }
 0x166   : > { %v685_v30 = vsel %vm677_vm10, %v673_v20, %v681_v24  ;;  %vm679_vm14 = vcmp.gt.f32.partialorder %v675_v26, 0.0  ;;  %v683_v31 = vmul.f32 0.01, %v675_v26  ;;  %vm718_vm10 = vmor %vm690_vm5, %vm717_vm2  ;;  %vm885_vm2 = vcmask 130048   ;;  %v1631_v20 = vld [vmem:[#allocation6 + $0x8] sm:$0xff]  }
 0x167   : > { %v686_v32 = vsel %vm678_vm11, %v674_v22, %v682_v28  ;;  %vm680_vm15 = vcmp.gt.f32.partialorder %v676_v29, 0.0  ;;  %v684_v33 = vmul.f32 0.01, %v676_v29  ;;  %vm748_vm11 = vmor %vm741_vm4, %vm400_vm0  ;;  %v1633_v22 = vld [vmem:[#allocation6 + $0x18] sm:$0xff]   ;;  %v1635_v24 = vld [vmem:[#allocation6 + $0x28] sm:$0xff]  }
 0x168   : > { %v1463_v34 = vpack.c.bf16 %v686_v32, %v685_v30  ;;  %v687_v35 = vsel %vm679_vm14, %v675_v26, %v683_v31  ;;  %v1636_v26 = vld [vmem:[#allocation6 + $0x30] sm:$0xff]   ;;  %v1638_v28 = vld [vmem:[#allocation6 + $0x40] sm:$0xff]   ;;  %v1779_v30 = vmov 0.0  }
 0x169   : > { %v688_v36 = vsel %vm680_vm15, %v676_v29, %v684_v33  ;;  %v1639_v29 = vld [vmem:[%s2145_s5] sm:$0xff]   ;;  %v1640_v31 = vld [vmem:[%s2145_s5 + $0x8] sm:$0xff]   ;;  %v1642_v32 = vld [vmem:[%s2145_s5 + $0x18] sm:$0xff]  }
 0x16a   : > { %v720_v37 = vshrl.u32 %v1463_v34, 16  ;;  %v1464_v38 = vpack.c.bf16 %v688_v36, %v687_v35  ;;  %v723_v40 = vshll.u32 %v1463_v34, 16  ;;  %v1643_v33 = vld [vmem:[%s2145_s5 + $0x20] ss:$0 sps:$4 sm:$0xff]  }
 0x16b   : > { %v1219_v34 = vsel %vm400_vm0, %v1643_v33, 0 }
 0x16c   : > { %v722_v39 = vrot.slane %v720_v37, 7  ;;  %v728_v41 = vshrl.u32 %v1464_v38, 16  ;;  %v731_v45 = vshll.u32 %v1464_v38, 16 }
 0x16e   : > { %v725_v43 = vor.u32 %v723_v40, %v722_v39  ;;  %v730_v44 = vrot.slane %v728_v41, 7  ;;  %v726_v47 = vrot.slane %v722_v39, 4 }
 0x170   : > { %v745_v48 = vsel %vm743_vm13, %v725_v43, %v744_v42  ;;  %v733_v49 = vor.u32 %v731_v45, %v730_v44  ;;  %v735_v50 = vrot.slane %v730_v44, 4 }
 0x171   : > { %746 = vst [vmem:[#allocation2] sm:$0xff] %v745_v48 }
 0x172   : > { %v734_v51 = vsel %vm718_vm10, %v726_v47, %v733_v49  ;;  %v751_v52 = vsel %vm695_vm12, %v735_v50, %v750_v46 }
 0x173   : > { %749 = vst.msk [vmem:[#allocation2 + $0x8] sm:$0xff] %vm748_vm11, %v734_v51  ;;  %752 = vst [vmem:[#allocation2 + $0x10] sm:$0x11] %v751_v52 }
 0x178   : > { %v1028_v57 = vld [vmem:[#allocation2] sm:$0xee] }
 0x17a   : > { %v754_v54 = vld [vmem:[#allocation2 + $0x8] sm:$0xff]  ;;  %v773_v56 = vld [vmem:[#allocation2 + $0x10] sm:$0x11] }
 0x17b   : > { %v1417_v58 = vcombine.high %v773_v56, %v773_v56  ;;  %v1439_v59 = vcombine.high %v1028_v57, %v754_v54  ;;  %v1416_v60 = vcombine.low %v773_v56, %v773_v56  ;;  %v1438_v61 = vcombine.low %v1028_v57, %v754_v54  ;;  %v1451_v56 = vld [vmem:[%s2146_s6] ss:$0 sm:$0xff] }
 0x17c   : > { %v1415_v62 = vcombine.high %v745_v48, %v754_v54  ;;  %v1414_v63 = vcombine.low %v745_v48, %v754_v54 }
 0x17d   : > { %v1056_v1 = vrot.slane %v1439_v59, 1  ;;  %v1057_v2 = vrot.slane %v1417_v58, 1  ;;  %v1053_v3 = vrot.slane %v1438_v61, 1  ;;  %v1054_v55 = vrot.slane %v1416_v60, 1 }
 0x17e   : > { %v821_v4 = vshll.u32 %v1415_v62, 16  ;;  %v826_v53 = vshll.u32 %v1417_v58, 16  ;;  %v809_v7 = vshll.u32 %v1414_v63, 16  ;;  %v814_v8 = vshll.u32 %v1416_v60, 16 }
 0x17f   : > { %v1058_v5 = vsel %vm556_vm3, %v1056_v1, %v1057_v2  ;;  %v1055_v6 = vsel %vm556_vm3, %v1053_v3, %v1054_v55  ;;  %v819_v9 = vshrl.u32 %v1415_v62, 16  ;;  %v807_v11 = vshrl.u32 %v1414_v63, 16 }
 0x180   : > { %1449 = vmatprep.mubr.msk.bf16.mxu0 %vm885_vm2, %v1058_v5  ;;  %v823_v10 = vrot.slane %v821_v4, 1  ;;  %v811_v12 = vrot.slane %v809_v7, 1  ;;  %v828_v14 = vrot.slane %v826_v53, 1  ;;  %v816_v16 = vrot.slane %v814_v8, 1 }
 0x181   : > { %1150 = vmatmul.mubr.bf16.vlgmr.msra.gmra.mrb[4].mxu0 %v1055_v6  ;;  %vm2170_vm3 = vcmask 588800  }
 0x182   : > { %v824_v13 = vor.u32 %v823_v10, %v819_v9  ;;  %v812_v15 = vor.u32 %v811_v12, %v807_v11 }
 0x184   : > { %v829_v18 = vsel %vm338_vm1, %v824_v13, %v828_v14  ;;  %v817_v19 = vsel %vm338_vm1, %v812_v15, %v816_v16  ;;  %vm1780_vm1 = vmmov 0  }
 0x185   : > { %1427 = vmatprep.mubr.msk.bf16.mxu1 %vm885_vm2, %v829_v18 }
 0x186   : > { %922 = vmatmul.mubr.bf16.vlgmr.msra.gmra.mrb[0].mxu1 %v817_v19 }
 0x187   : > { %988 = vmatpush1.bf16.msra.mxu1 %v1630_v17  ;;  %1437 = vmatprep.mubr.msk.bf16.mxu1 %vm885_vm2, %v1415_v62 }
 0x188   : > { %989 = vmatprep.subr.bf16.mxu1 %v1778_v0 }
 0x18b   : > { %990 = vmatpush1.bf16.msra.mxu1 %v1631_v20 }
 0x18c   : > { %991 = vmatprep.subr.bf16.mxu1 %v1778_v0 }
 0x18f   : > { %992 = vmatpush1.bf16.msra.mxu1 %v1632_v21 }
 0x190   : > { %993 = vmatprep.subr.bf16.mxu1 %v1778_v0 }
 0x193   : > { %994 = vmatpush1.bf16.msra.mxu1 %v1633_v22 }
 0x194   : > { %995 = vmatprep.subr.bf16.mxu1 %v1778_v0 }
 0x197   : > { %996 = vmatpush1.bf16.msra.mxu1 %v1634_v23 }
 0x198   : > { %997 = vmatprep.subr.bf16.mxu1 %v1778_v0 }
 0x19b   : > { %998 = vmatpush1.bf16.msra.mxu1 %v1635_v24 }
 0x19c   : > { %999 = vmatprep.subr.bf16.mxu1 %v1778_v0 }
 0x19f   : > { %1000 = vmatpush1.bf16.msra.mxu1 %v1636_v26 }
 0x1a0   : > { %1001 = vmatprep.subr.bf16.mxu1 %v1778_v0 }
 0x1a3   : > { %1002 = vmatpush1.bf16.msra.mxu1 %v1637_v27 }
 0x1a4   : > { %1003 = vmatprep.subr.bf16.mxu1 %v1778_v0  ;;  %v1641_v0 = vld [vmem:[%s2145_s5 + $0x10] sm:$0xff]  }
 0x1a7   : > { %1004 = vmatpush1.bf16.msra.mxu1 %v1638_v28 }
 0x1a8   : > { %1472 = vmatprep.subr.bf16.mxu1 %v1779_v30 }
 0x1aa   : > { %1020 = vmatmul.mubr.bf16.vlgmr.msra.gmra.mrb[4].mxu1 %v1414_v63 }
 0x1ab   : > { %1473 = vmatpush3.bf16.msra.mxu1 %v1639_v29  ;;  %1482 = vmatprep.mubr.msk.bf16.mxu1 %vm1780_vm1, %v1779_v30 }
 0x1ac   : > { %1474 = vmatprep.subr.bf16.mxu1 %v1779_v30 }
 0x1af   : > { %1475 = vmatpush3.bf16.msra.mxu1 %v1640_v31 }
 0x1b0   : > { %1476 = vmatprep.subr.bf16.mxu1 %v1779_v30 }
 0x1b3   : > { %1477 = vmatpush3.bf16.msra.mxu1 %v1641_v0 }
 0x1b4   : > { %1478 = vmatprep.subr.bf16.mxu1 %v1779_v30 }
 0x1b7   : > { %1479 = vmatpush3.bf16.msra.mxu1 %v1642_v32 }
 0x1b8   : > { %1480 = vmatprep.subr.bf16.mxu1 %v1779_v30 }
 0x1bb   : > { %1481 = vmatpush3.bf16.msra.mxu1 %v1219_v34 }
 0x1be   : > { %1483 = vmatmul.mubr.msk.bf16.vlgmr.msra.gmra.mrb[8].mxu1 %vm2170_vm3, %v1961_v25  ;;  %v1450_v25 = vld [vmem:[%s2144_s4] ss:$0 sm:$0xff] }
 0x254   : > { %v1151_v35 = vpop.f32.mrb[4].mxu0 }
 0x255   : > { %v1153_v36 = vpop.f32.mrb[5].mxu0 }
 0x256   : > { %v1154_v37 = vpop.f32.mrb[6].mxu0 }
 0x257   : > { %v1156_v38 = vpop.f32.mrb[7].mxu0 }
 0x259   : > { %v923_v39 = vpop.f32.mrb[0].mxu1 }
 0x25a   : > { %v925_v40 = vpop.f32.mrb[1].mxu1 }
 0x25b   : > { %v926_v41 = vpop.f32.mrb[2].mxu1 }
 0x25c   : > { %v928_v42 = vpop.f32.mrb[3].mxu1 }
 0x27d   : > { %v1021_v43 = vpop.f32.mrb[4].mxu1 }
 0x27e   : > { %v1022_v44 = vadd.f32 %v1021_v43, %v923_v39  ;;  %v1023_v45 = vpop.f32.mrb[5].mxu1 }
 0x27f   : > { %v1024_v46 = vpop.f32.mrb[6].mxu1 }
 0x280   : > { %v1158_v47 = vadd.f32 %v1151_v35, %v1022_v44  ;;  %v1025_v48 = vadd.f32 %v1024_v46, %v926_v41  ;;  %v1026_v49 = vpop.f32.mrb[7].mxu1 }
 0x282   : > { %v1159_v50 = vadd.f32 %v1154_v37, %v1025_v48  ;;  %v1167_v51 = vadd.f32 %v1450_v25, %v1158_v47 }
 0x284   : > { %v1168_v52 = vadd.f32 %v1450_v25, %v1159_v50  ;;  %v1171_v54 = vmul.f32 0.01, %v1167_v51  ;;  %vm1169_vm0 = vcmp.gt.f32.partialorder %v1167_v51, 0.0 }
 0x286   : > { %v1172_v58 = vmul.f32 0.01, %v1168_v52  ;;  %vm1170_vm5 = vcmp.gt.f32.partialorder %v1168_v52, 0.0  ;;  %v1173_v61 = vsel %vm1169_vm0, %v1167_v51, %v1171_v54 }
 0x288   : > { %v1174_v3 = vsel %vm1170_vm5, %v1168_v52, %v1172_v58 }
 0x291   : > { %v1255_v57 = vpop.f32.mrb[8].mxu1 }
 0x292   : > { %v1256_v59 = vadd.f32 %v1451_v56, %v1255_v57  ;;  %v1484_v60 = vpop.f32.mrb[9].mxu1 }
 0x293   : > { %v1258_v62 = vpop.f32.mrb[10].mxu1 }
 0x294   : > { %v1262_v63 = vadd.f32 %v1256_v59, %v1173_v61  ;;  %v1259_v1 = vadd.f32 %v1451_v56, %v1258_v62  ;;  %v1485_v2 = vpop.f32.mrb[11].mxu1 }
 0x296   : > { %1264 = vst [vmem:[%s301_s8] sm:$0xff] %v1262_v63  ;;  %v1263_v55 = vadd.f32 %v1259_v1, %v1174_v3 }
 0x298   : > { %1265 = vst [vmem:[%s301_s8 + $0x8] sm:$0xff] %v1263_v55 }
 0x299   : > { %1713 = shalt.err (!%p1710_p11)
}
 0x29a   : > { %s1714_s20 = scalar_lea.hbm %s2097_s17, 256  ;;  %s1718_s23 = scalar_lea.hbm %s2147_s7, 512 }
 0x29b   : > { %p1715_p13 = scmp.ne.s32.totalorder %s2097_s17, %s1714_s20  ;;  %p1719_p6 = scmp.lt.u32.totalorder %s2097_s17, %s2147_s7 }
 0x29c   : > { %p1720_p9 = scmp.lt.u32.totalorder %s1718_s23, %s1714_s20  ;;  %p1722_p12 = scmp.lt.u32.totalorder %s1714_s20, %s2097_s17 }
 0x29d   : > { %p1716_p0 = pnand %p1715_p13, %p2171_p1 }
 0x29e   : > { %p1721_p10 = por %p1720_p9, %p1719_p6 }
 0x29f   : > { %p1717_p5 = pneg %p1716_p0 }
 0x2a0   : > { %p1723_p2 = por %p1722_p12, %p1721_p10 }
 0x2a2   : > { %p1724_p3 = pnand %p1723_p2, %p1717_p5 }
 0x2a4   : > { %1727 = shalt.err (!%p1724_p3)
}
 0x2a5   : > { %s1782_s15 = smov 128   ;;  %s1783_s10 = smov 8  }
 0x2a6   : > { %1503 = dma.vmem_to_hbm [thread:$0]  (%p2171_p1), %s2092_s9, 256, %s2097_s17, %s2099_s28, %s1782_s15, %s1782_s15, %s1783_s10  }
 0x2a7 PF: > { %p1520_p4 = scmp.ge.s32.totalorder %s1770_s27, 2  ;;  %s1295_s14 = sand.u32 1, %s1758_s24  }
 0x2a8   : > { %p2172_p7 = scmp.ne.s32.totalorder %s2154_s12, 0  ;;  %s1296_s19 = scalar_lea.sflag [#allocation5], %s1295_s14 }
 0x2aa   : > { %p1513_p8 = pnand %p1520_p4, %p2172_p7 }
 0x2ac   : > { %1753 = dma.done.wait (!%p1513_p8), %s1296_s19, 256  }
 0x2ad   : > { %1755 = vsyncadd (!%p1513_p8), %s1296_s19, 4294967040  ;;  %s2173_s13 = sld [smem:[#allocation12_spill]]  ;;  %p19_p11 = scmp.ge.s32.totalorder %s1849_s30, 4  }
 0x2ae   : > { %s2174_s24 = smov %s1762_s25  ;;  %s2175_s25 = smov %s1766_s26 }
 0x2af   : > { %s2177_s27 = smov %s1849_s30  ;;  %21 = sbr.rel (!%p19_p11) target bundleno = 5 (0x5), region = 96 }
 0x2b3   : > { %s2176_s26 = smov %s2173_s13 }
 0x2b6   :  { %1301 = vsyncpa [#allocation4], 1 }
 0x2b7   :  { %1303 = vsyncpa [#allocation4 + $0x1], 1 }
 0x2b8   :  { %1304 = vsyncpa [#allocation7], 1 }
 0x2b9   :  { %1305 = vsyncpa [#allocation5], 1 }
 0x2ba   :  { %1307 = vsyncpa [#allocation5 + $0x1], 1 }

</bundles_post_ra>
